<compile_context>
chip_gen: v7x
topology: tpu7x:2x2x1
jax: 0.10.0
libtpu: 0.0.40
codegen_flags: <defaults>
</compile_context>

<pallas_src>
import math

import jax
import jax.numpy as jnp
from jax.experimental import pallas as pl
from jax.experimental.pallas import tpu as pltpu


def _bos_copy_kernel(tok_ref, out_ref):
    # Whole forward pass: copy the parameter tile (output aliases input).
    out_ref[...] = tok_ref[...]


def bos_token_forward(bos_token: jax.Array) -> jax.Array:
    """Recommended path: BosToken.forward() is an identity — return the
    parameter directly (zero-cost alias, no kernel launch)."""
    return bos_token


def bos_token_forward_pallas(bos_token: jax.Array) -> jax.Array:
    """Minimal Pallas path (kept for framework symmetry):
    gridless, single whole-array VMEM block, output aliased to the input."""
    return pl.pallas_call(
        _bos_copy_kernel,
        out_shape=jax.ShapeDtypeStruct(bos_token.shape, bos_token.dtype),
        in_specs=[pl.BlockSpec(memory_space=pltpu.MemorySpace.VMEM)],
        out_specs=pl.BlockSpec(memory_space=pltpu.MemorySpace.VMEM),
        input_output_aliases={0: 0},
    )(bos_token)


def init_bos_token(key: jax.Array, d_model: int, dtype=jnp.float32) -> jax.Array:
    """xavier_uniform_ on a (1, 1, d_model) tensor:
    fan_in = fan_out = d_model  ->  bound = sqrt(6 / (2*d_model))."""
    bound = math.sqrt(6.0 / (2.0 * d_model))
    return jax.random.uniform(
        key, (1, 1, d_model), dtype=dtype, minval=-bound, maxval=bound
    )


if __name__ == "__main__":
    import numpy as np

    # Lane-dense last dim (multiple of 128) per the perf review, still small.
    d_model = 128
    key = jax.random.PRNGKey(0)
    bos_token = init_bos_token(key, d_model)

    # Host snapshot of the parameter before the (potentially aliasing) call.
    expected = np.asarray(bos_token)

    # Fast identity path (the real recommendation).
    fast = bos_token_forward(bos_token)
    assert np.allclose(np.asarray(fast), expected)

    # Minimal Pallas path.
    out = jax.block_until_ready(bos_token_forward_pallas(bos_token))
    assert out.shape == (1, 1, d_model)
    assert out.dtype == bos_token.dtype
    assert np.allclose(np.asarray(out), expected)

    print("KERNEL_OK")
</pallas_src>

<mosaic_0001>
module attributes {stable_mosaic.version = 11 : i64} {
  func.func @_bos_copy_kernel(%arg0: memref<1x1x128xf32, #tpu.memory_space<vmem>>, %arg1: memref<1x1x128xf32, #tpu.memory_space<vmem>>) attributes {dimension_semantics = [], scalar_prefetch = 0 : i64, scratch_operands = 0 : i64, tpu.core_type = #tpu.core_type<tc>} {
    %c0 = arith.constant 0 : index
    %c0_0 = arith.constant 0 : index
    %c0_1 = arith.constant 0 : index
    %0 = vector.load %arg0[%c0, %c0_0, %c0_1] : memref<1x1x128xf32, #tpu.memory_space<vmem>>, vector<1x1x128xf32>
    %c0_2 = arith.constant 0 : index
    %c0_3 = arith.constant 0 : index
    %c0_4 = arith.constant 0 : index
    %1 = vector.load %arg1[%c0_2, %c0_3, %c0_4] : memref<1x1x128xf32, #tpu.memory_space<vmem>>, vector<1x1x128xf32>
    tpu.vector_store %arg1[%c0_2, %c0_3, %c0_4], %0 {strides = array<i32>} : memref<1x1x128xf32, #tpu.memory_space<vmem>>, vector<1x1x128xf32>,
    return
  }
}

</mosaic_0001>

<bundles_post_ra>
// kernel: tpu_custom_call.1
= control target key start
LH: loop header
LB: loop body
LE: loop exit
PB: predicated region body
PF: predicated region fallthrough
CT: control target
= control target key end

     0   :  { %6 = vsyncpa [#allocation3], 0  ;;  %s124_s0 = inlined_call_operand.hbm [shape: f32[1,1,128], index: 0, kind: input, shape index: {}, may-alias: {0,1}]   ;;  %s125_s1 = inlined_call_operand.hbm [shape: f32[1,1,128], index: 1, kind: output, shape index: {}, may-alias: {0,1}]  }
   0x1   :  { %7 = vsyncpa [#allocation4], 0  ;;  %s88_s6 = smov [#allocation2]   ;;  %s40_s10 = scalar_lea.hbm %s124_s0, 16 }
   0x2   :  { %s14_s7 = sshll.u32 %s88_s6, 4  ;;  %p41_p0 = scmp.ne.s32.totalorder %s124_s0, %s40_s10  ;;  %s15_s7 = int_to_ptr.vmem [resolvable:$true] %s14_s7 }
   0x3   :  { %p44_p1 = scmp.lt.u32.totalorder %s40_s10, %s124_s0 }
   0x5   :  { %p46_p2 = pnand %p44_p1, %p41_p0 }
   0x7   :  { %49 = shalt.err (!%p46_p2)
}
   0x8   :  { %s50_s15 = scalar_lea.vmem %s15_s7, 16  ;;  %s54_s16 = scalar_lea.vmem %s15_s7, 32 }
   0x9   :  { %p51_p3 = scmp.ne.s32.totalorder %s15_s7, %s50_s15  ;;  %p55_p4 = scmp.lt.s32.totalorder %s15_s7, %s15_s7 }
   0xa   :  { %p56_p5 = scmp.lt.s32.totalorder %s54_s16, %s50_s15 }
   0xc   :  { %p57_p6 = por %p56_p5, %p55_p4 }
   0xe   :  { %p58_p7 = pnand %p57_p6, %p51_p3 }
  0x10   :  { %61 = shalt.err (!%p58_p7)
}
  0x11   :  { %17 = dma.hbm_to_vmem [thread:$0]  %s124_s0, 16, %s15_s7, [#allocation3]  }
  0x12   :  { %84 = dma.done.wait [#allocation3], 16  }
  0x13   :  { %85 = vsyncadd [#allocation3], 4294967280  ;;  %s89_s19 = smov [#allocation5]   ;;  %v21_v0 = vld [vmem:[#allocation2] sm:$0x1] }
  0x14   :  { %s29_s20 = sshll.u32 %s89_s19, 4  ;;  %22 = vst [vmem:[#allocation5] sm:$0x1] %v21_v0  ;;  %s30_s20 = int_to_ptr.vmem [resolvable:$true] %s29_s20 }
  0x15   :  { %s62_s21 = scalar_lea.vmem %s30_s20, 16  ;;  %s66_s22 = scalar_lea.vmem %s30_s20, 32 }
  0x16   :  { %p63_p8 = scmp.ne.s32.totalorder %s30_s20, %s62_s21  ;;  %p67_p9 = scmp.lt.s32.totalorder %s30_s20, %s30_s20 }
  0x17   :  { %p68_p10 = scmp.lt.s32.totalorder %s66_s22, %s62_s21 }
  0x19   :  { %p69_p11 = por %p68_p10, %p67_p9 }
  0x1b   :  { %p70_p12 = pnand %p69_p11, %p63_p8 }
  0x1d   :  { %73 = shalt.err (!%p70_p12)
}
  0x1e   :  { %s74_s25 = scalar_lea.hbm %s125_s1, 16 }
  0x1f   :  { %p75_p13 = scmp.ne.s32.totalorder %s125_s1, %s74_s25  ;;  %p78_p0 = scmp.lt.u32.totalorder %s74_s25, %s125_s1 }
  0x21   :  { %p80_p1 = pnand %p78_p0, %p75_p13 }
  0x23   :  { %83 = shalt.err (!%p80_p1)
}
  0x24   :  { %32 = dma.vmem_to_hbm [thread:$0]  %s30_s20, 16, %s125_s1, [#allocation4]  }
  0x25   :  { %86 = dma.done.wait [#allocation4], 16  }
  0x26   :  { %87 = vsyncadd [#allocation4], 4294967280 }
  0x27   :  { %36 = vsyncpa [#allocation3], 1 }
  0x28   :  { %37 = vsyncpa [#allocation4], 1 }

</bundles_post_ra>
